<compile_context>
chip_gen: v5e
topology: v5e:2x2
jax: 0.10.0
libtpu: 0.0.40
codegen_flags: <defaults>
</compile_context>

<pallas_src>
import functools

import numpy as np
import jax
import jax.numpy as jnp
from jax import lax
from jax.experimental import pallas as pl
from jax.experimental.pallas import tpu as pltpu  # noqa: F401  (TPU backend)


# ------------------------------- config ------------------------------------
CFG = dict(
    bev_x_bound=[-8.0, 8.0, 1.0],
    bev_y_bound=[-8.0, 8.0, 1.0],
    bev_z_bound=[-1.0, 1.0, 2.0],
    d_bound=[1.0, 5.0, 1.0],        # -> 4 depth bins
    final_dim=(32, 32),             # input image size
    bev_down_sample=8,              # feature map is 4 x 4
    img_down_sample=1.0,
    feat_channels=8,
)
# TODO(synk): CamModel reads a calibration file; replaced by a synthetic
# pinhole camera so pixel2cam stays analytic and deterministic.
INTRINSICS = dict(fx=20.0, fy=20.0, cx=15.5, cy=15.5)


def calculate_birds_eye_view_parameters(x_bound, y_bound, z_bound):
    bounds = (x_bound, y_bound, z_bound)
    dx = jnp.array([b[2] for b in bounds], jnp.float32)
    bx = jnp.array([b[0] + b[2] / 2.0 for b in bounds], jnp.float32)
    nx = tuple(int(round((b[1] - b[0]) / b[2])) for b in bounds)
    return dx, bx, nx


def create_frustum(cfg):
    h, w = cfg["final_dim"]
    ds = cfg["bev_down_sample"]
    dsh, dsw = h // ds, w // ds
    depth_grid = jnp.arange(*cfg["d_bound"], dtype=jnp.float32)          # (D,)
    d = depth_grid.shape[0]
    depth_grid = jnp.broadcast_to(depth_grid[:, None, None], (d, dsh, dsw))
    x_grid = jnp.broadcast_to(
        jnp.linspace(0.0, w - 1, dsw, dtype=jnp.float32)[None, None, :],
        (d, dsh, dsw))
    y_grid = jnp.broadcast_to(
        jnp.linspace(0.0, h - 1, dsh, dtype=jnp.float32)[None, :, None],
        (d, dsh, dsw))
    return jnp.stack([x_grid, y_grid, depth_grid], axis=-1)              # (D,H,W,3)


# ------------------------------ fused Pallas kernel --------------------------
def _fused_bev_kernel(patch_ref, wd_ref, wf_ref, ws_ref, bd_ref, bf_ref, bs_ref,
                      vox_ref, bev_ref, depth_ref, sem_ref, *, V):
    """CamEncode head + softmaxes + semantic gating + LSS lift + voxel scatter-sum."""
    patches = patch_ref[...]                                   # (P, Cin)

    # Three separate heads (depth / feature / semantic) -> each result starts
    # at lane 0 (no sub-vreg lane slicing of a fused 14-wide logits block);
    # each dot is essentially free at K=192 with tiny N.
    d_log = jnp.dot(patches, wd_ref[...],
                    preferred_element_type=jnp.float32) + bd_ref[...]      # (P, D)
    feat = jnp.dot(patches, wf_ref[...],
                   preferred_element_type=jnp.float32) + bf_ref[...]       # (P, CF)
    s_log = jnp.dot(patches, ws_ref[...],
                    preferred_element_type=jnp.float32) + bs_ref[...]      # (P, 2)

    # Depth softmax over D bins; divide moved to the EUP via approx reciprocal.
    d_shift = d_log - jnp.max(d_log, axis=-1, keepdims=True)
    d_exp = jnp.exp(d_shift)
    depth = d_exp * pl.reciprocal(jnp.sum(d_exp, axis=-1, keepdims=True),
                                  approx=True)
    # 2-class semantic softmax.
    s_shift = s_log - jnp.max(s_log, axis=-1, keepdims=True)
    s_exp = jnp.exp(s_shift)
    sem = s_exp * pl.reciprocal(jnp.sum(s_exp, axis=-1, keepdims=True),
                                approx=True)
    depth_ref[...] = depth
    sem_ref[...] = sem

    # Semantic gating: sem[:, 1] > 0.5  <=>  s_log[:, 1] > s_log[:, 0] (exact,
    # independent of the approximate divide).  Fold the gate into the depth
    # weights (zero weight == dropped point) instead of rewriting voxel ids.
    kept = s_log[:, 1:2] > s_log[:, 0:1]                       # (P, 1)
    depth_g = jnp.where(kept, depth, 0.0)                      # (P, D)

    # Depth-weighted one-hot scatter matrix:
    #   W[p, v] = sum_d depth_g[p, d] * (vox[p, d] == v).
    # vox == -1 (out-of-bounds) never matches a lane index, so those points
    # drop out for free.  This folds the lift (depth x feature outer product)
    # into the scatter weights.
    vox = vox_ref[...]                                          # (P, D) int32
    P, D = vox.shape
    v_row = lax.broadcasted_iota(jnp.int32, (P, V), 1)          # lane-dense (P, V)
    wgt = jnp.where(vox[:, 0:1] == v_row, depth_g[:, 0:1], 0.0)
    for d in range(1, D):     # D = 4 static depth bins, unrolled at trace time
        wgt = wgt + jnp.where(vox[:, d:d + 1] == v_row, depth_g[:, d:d + 1], 0.0)

    # Lane-dense scatter-sum: bev^T (C, V) = feat^T (C, P) @ W (P, V).
    # V is a multiple of 128 -> unmasked full-width stores, MXU N = V.
    # TODO(synk): at production BEV resolutions replace the one-hot matmul with a
    # sorted/segmented sum (scalar-prefetched segment offsets) and tile V against
    # VMEM capacity (64 MiB on v7x); bf16 operands would also be worthwhile there.
    bev_ref[...] = jnp.dot(feat.T, wgt, preferred_element_type=jnp.float32)


def fused_bev_pallas(patches, wd, wf, ws, bd, bf, bs, vox, *, num_voxels):
    p_pix = patches.shape[0]
    d = wd.shape[1]
    cf = wf.shape[1]
    # Gridless single invocation: all operands are KiB-scale, so one step is
    # strictly better than a tiled grid (no per-step overhead, no re-DMA of
    # constant blocks).
    # TODO(synk): once P_pix grows (more cameras / resolution), add a
    # ("parallel",) row grid over P_pix / V so v7x's two TensorCores split work.
    return pl.pallas_call(
        functools.partial(_fused_bev_kernel, V=num_voxels),
        out_shape=(
            jax.ShapeDtypeStruct((cf, num_voxels), jnp.float32),   # bev^T (lane-dense)
            jax.ShapeDtypeStruct((p_pix, d), jnp.float32),         # depth distribution
            jax.ShapeDtypeStruct((p_pix, 2), jnp.float32),         # semantic softmax
        ),
    )(patches, wd, wf, ws, bd, bf, bs, vox)


# --------------------------------- model ------------------------------------
class MonocularBevModelPallas:
    def __init__(self, cfg, key):
        self.cfg = cfg
        self.dx, self.bx, self.nx = calculate_birds_eye_view_parameters(
            cfg["bev_x_bound"], cfg["bev_y_bound"], cfg["bev_z_bound"])
        self.down_sample = cfg["bev_down_sample"]
        self.frustum = create_frustum(cfg)                    # (D, H, W, 3)
        self.depth_channel = self.frustum.shape[0]
        self.feat_channels = cfg["feat_channels"]
        # TODO(synk): CamEncode's EfficientNet backbone is replaced by a single
        # strided-conv head (kernel=stride=down_sample) with deterministic random
        # weights, split into depth / feature / semantic matrices; output
        # semantics and all downstream math are preserved.
        cin = 3 * self.down_sample * self.down_sample         # im2col columns
        D, CF = self.depth_channel, self.feat_channels
        ks = jax.random.split(key, 6)

        def init(k, shape, scale):
            # Round params to the bf16 grid so the self-check is independent of
            # the MXU's f32 pass count (products become exact in any precision).
            w = jax.random.normal(k, shape, jnp.float32) * scale
            return w.astype(jnp.bfloat16).astype(jnp.float32)

        self.wd = init(ks[0], (cin, D), 1.0 / np.sqrt(cin))
        self.wf = init(ks[1], (cin, CF), 1.0 / np.sqrt(cin))
        self.ws = init(ks[2], (cin, 2), 1.0 / np.sqrt(cin))
        self.bd = init(ks[3], (1, D), 0.1)
        self.bf = init(ks[4], (1, CF), 0.1)
        self.bs = init(ks[5], (1, 2), 0.1)

    # --------------------------- geometry (glue) ----------------------------
    def get_geometry(self, extrinsic):
        rotation = extrinsic[..., :3, :3]
        translation = extrinsic[..., :3, 3]
        batch_size = extrinsic.shape[0]
        pts = self.frustum[None]                              # (1, D, H, W, 3)
        uv = pts[..., :2] * self.cfg["img_down_sample"]
        d = pts[..., 2:3]
        fx, fy, cx, cy = (INTRINSICS[k] for k in ("fx", "fy", "cx", "cy"))
        xc = (uv[..., 0:1] - cx) * d / fx                     # pixel2cam (pinhole)
        yc = (uv[..., 1:2] - cy) * d / fy
        pts_cam = jnp.concatenate([xc, yc, d], axis=-1).reshape(-1, 3)
        pts_base = pts_cam @ rotation[0].T + translation[0]   # matches torch: uses [0]
        pts_base = pts_base.reshape(pts.shape)                # (1, D, H, W, 3)
        pts_base = jnp.broadcast_to(pts_base[None],
                                    (batch_size,) + pts_base.shape)
        return pts_base                                       # (B, 1, D, H, W, 3)

    def _vox_from_geometry(self, extrinsic):
        """Per-(pixel, depth-bin) flat voxel index from geometry only (no encoder)."""
        geom = self.get_geometry(extrinsic)                   # (B, N, D, H, W, 3)
        B, N, D, H, W, _ = geom.shape
        nx0, nx1, nx2 = self.nx
        gidx = ((geom - (self.bx - self.dx / 2.0)) / self.dx).astype(jnp.int32)
        in_bounds = ((gidx[..., 0] >= 0) & (gidx[..., 0] < nx0)
                     & (gidx[..., 1] >= 0) & (gidx[..., 1] < nx1)
                     & (gidx[..., 2] >= 0) & (gidx[..., 2] < nx2))
        b_ix = jnp.arange(B, dtype=jnp.int32).reshape(B, 1, 1, 1, 1)
        # flat voxel index laid out as (batch, z, x, y); -1 drops the point
        vox = ((b_ix * nx2 + gidx[..., 2]) * nx0 + gidx[..., 0]) * nx1 + gidx[..., 1]
        vox = jnp.where(in_bounds, vox, -1)
        # reorder (B,N,D,H,W) -> (B,N,H,W,D) so rows match the im2col pixel order
        vox = jnp.transpose(vox, (0, 1, 3, 4, 2)).reshape(B * N * H * W, D)
        return vox.astype(jnp.int32)

    def _im2col(self, images):
        b, n, c, h, w = images.shape
        ds = self.down_sample
        dsh, dsw = h // ds, w // ds
        patches = images.reshape(b, n, c, dsh, ds, dsw, ds)
        patches = jnp.transpose(patches, (0, 1, 3, 5, 2, 4, 6))
        return patches.reshape(b * n * dsh * dsw, c * ds * ds), (dsh, dsw)

    # -------------------------------- api ------------------------------------
    def calc_bev_feature(self, images, extrinsic):
        b, n = images.shape[0], images.shape[1]
        patches, (dsh, dsw) = self._im2col(images)            # (P_pix, Cin)
        vox = self._vox_from_geometry(extrinsic)              # (P_pix, D) int32
        nx0, nx1, nx2 = self.nx
        num_voxels = b * nx2 * nx0 * nx1

        bev_t, depth_flat, sem_flat = fused_bev_pallas(
            patches, self.wd, self.wf, self.ws, self.bd, self.bf, self.bs,
            vox, num_voxels=num_voxels)

        C, D = self.feat_channels, self.depth_channel
        # bev^T (C, V) -> (B, nz*C, nx0, nx1)   (torch: cat(final.unbind(dim=2), 1))
        bev = bev_t.reshape(C, b, nx2, nx0, nx1)
        bev = jnp.transpose(bev, (1, 2, 0, 3, 4)).reshape(b, nx2 * C, nx0, nx1)
        pred_depth = depth_flat.reshape(b * n, dsh, dsw, D).transpose(0, 3, 1, 2)
        semantic_mask = sem_flat.reshape(b * n, dsh, dsw, 2).transpose(0, 3, 1, 2)
        return bev, pred_depth, semantic_mask

    def forward(self, images, prev_images, trans, extrinsic):
        # prev_images / trans are unused in the reference forward as well.
        return self.calc_bev_feature(images, extrinsic)


# ------------------------------ pure-JAX reference ---------------------------
def reference_forward(model, images, extrinsic):
    """Scatter-add reference of the fused kernel's math."""
    b, n = images.shape[0], images.shape[1]
    patches, (dsh, dsw) = model._im2col(images)
    d_log = patches @ model.wd + model.bd
    feat = patches @ model.wf + model.bf
    s_log = patches @ model.ws + model.bs
    depth = jax.nn.softmax(d_log, axis=-1)
    sem = jax.nn.softmax(s_log, axis=-1)
    vox = model._vox_from_geometry(extrinsic)
    kept = s_log[:, 1] > s_log[:, 0]                          # == (sem[:, 1] > 0.5)
    vox = jnp.where(kept[:, None], vox, -1)

    nx0, nx1, nx2 = model.nx
    C, D = model.feat_channels, model.depth_channel
    V = b * nx2 * nx0 * nx1
    pts_feat = (depth[:, :, None] * feat[:, None, :]).reshape(-1, C)   # (P*D, C)
    vox_flat = vox.reshape(-1)
    safe = jnp.where(vox_flat >= 0, vox_flat, V)
    bev_flat = jnp.zeros((V + 1, C), jnp.float32).at[safe].add(pts_feat)[:V]
    bev = bev_flat.reshape(b, nx2, nx0, nx1, C)
    bev = jnp.transpose(bev, (0, 1, 4, 2, 3)).reshape(b, nx2 * C, nx0, nx1)
    pred_depth = depth.reshape(b * n, dsh, dsw, D).transpose(0, 3, 1, 2)
    semantic_mask = sem.reshape(b * n, dsh, dsw, 2).transpose(0, 3, 1, 2)
    return bev, pred_depth, semantic_mask


# --------------------------------- main --------------------------------------
if __name__ == "__main__":
    key = jax.random.PRNGKey(0)
    k_img, k_prev, k_param = jax.random.split(key, 3)

    B, Ncam = 2, 1
    H_img, W_img = CFG["final_dim"]
    # Inputs rounded to the bf16 grid: matmul products are then exact under any
    # MXU precision mode, so the self-check tolerance only absorbs the EUP
    # approximate-reciprocal error (~1e-4 relative).
    images = jax.random.uniform(k_img, (B, Ncam, 3, H_img, W_img), jnp.float32)
    images = images.astype(jnp.bfloat16).astype(jnp.float32)
    prev_images = jax.random.uniform(k_prev, (B, Ncam, 3, H_img, W_img), jnp.float32)
    trans = jnp.zeros((B, 3), jnp.float32)

    # camera -> base: camera z (depth) -> base x, camera x -> -base y, camera y -> -base z
    rot = jnp.array([[0.0, 0.0, 1.0],
                     [-1.0, 0.0, 0.0],
                     [0.0, -1.0, 0.0]], jnp.float32)
    extrinsic = jnp.zeros((B, 4, 4), jnp.float32)
    extrinsic = extrinsic.at[:, :3, :3].set(rot)
    extrinsic = extrinsic.at[:, :3, 3].set(jnp.array([0.5, 0.2, 0.1], jnp.float32))
    extrinsic = extrinsic.at[:, 3, 3].set(1.0)

    model = MonocularBevModelPallas(CFG, k_param)
    fwd = jax.jit(model.forward)
    bev, pred_depth, sem_mask = fwd(images, prev_images, trans, extrinsic)
    jax.block_until_ready((bev, pred_depth, sem_mask))

    # ---- pure-JAX reference check of the fused Pallas path ----
    bev_ref, depth_ref, sem_ref = reference_forward(model, images, extrinsic)
    # 5e-3 tolerance covers pl.reciprocal(approx=True) plus summation-order noise.
    np.testing.assert_allclose(np.asarray(pred_depth), np.asarray(depth_ref),
                               rtol=5e-3, atol=5e-3)
    np.testing.assert_allclose(np.asarray(sem_mask), np.asarray(sem_ref),
                               rtol=5e-3, atol=5e-3)
    np.testing.assert_allclose(np.asarray(bev), np.asarray(bev_ref),
                               rtol=5e-3, atol=5e-3)

    print("KERNEL_OK")
</pallas_src>

<mosaic_0001>
module attributes {stable_mosaic.version = 11 : i64} {
  func.func @_fused_bev_kernel(%arg0: memref<32x192xf32, #tpu.memory_space<vmem>>, %arg1: memref<192x4xf32, #tpu.memory_space<vmem>>, %arg2: memref<192x8xf32, #tpu.memory_space<vmem>>, %arg3: memref<192x2xf32, #tpu.memory_space<vmem>>, %arg4: memref<1x4xf32, #tpu.memory_space<vmem>>, %arg5: memref<1x8xf32, #tpu.memory_space<vmem>>, %arg6: memref<1x2xf32, #tpu.memory_space<vmem>>, %arg7: memref<32x4xi32, #tpu.memory_space<vmem>>, %arg8: memref<8x512xf32, #tpu.memory_space<vmem>>, %arg9: memref<32x4xf32, #tpu.memory_space<vmem>>, %arg10: memref<32x2xf32, #tpu.memory_space<vmem>>) attributes {dimension_semantics = [], scalar_prefetch = 0 : i64, scratch_operands = 0 : i64, tpu.core_type = #tpu.core_type<tc>} {
    %c0 = arith.constant 0 : index
    %c0_0 = arith.constant 0 : index
    %0 = vector.load %arg0[%c0, %c0_0] : memref<32x192xf32, #tpu.memory_space<vmem>>, vector<32x192xf32>
    %c0_1 = arith.constant 0 : index
    %c0_2 = arith.constant 0 : index
    %1 = vector.load %arg1[%c0_1, %c0_2] : memref<192x4xf32, #tpu.memory_space<vmem>>, vector<192x4xf32>
    %cst = arith.constant dense<0.000000e+00> : vector<32x4xf32>
    %2 = tpu.matmul %0, %1, %cst {dimension_numbers = #tpu.dot_dimension_numbers<[1], [0], [0], [1], [0, 0, 1, 1], [], []>} : vector<32x192xf32>, vector<192x4xf32>, vector<32x4xf32> -> vector<32x4xf32>
    %c0_3 = arith.constant 0 : index
    %c0_4 = arith.constant 0 : index
    %3 = vector.load %arg4[%c0_3, %c0_4] : memref<1x4xf32, #tpu.memory_space<vmem>>, vector<1x4xf32>
    %4 = vector.broadcast %3 : vector<1x4xf32> to vector<32x4xf32>
    %5 = arith.addf %2, %4 : vector<32x4xf32>
    %c0_5 = arith.constant 0 : index
    %c0_6 = arith.constant 0 : index
    %6 = vector.load %arg2[%c0_5, %c0_6] : memref<192x8xf32, #tpu.memory_space<vmem>>, vector<192x8xf32>
    %cst_7 = arith.constant dense<0.000000e+00> : vector<32x8xf32>
    %7 = tpu.matmul %0, %6, %cst_7 {dimension_numbers = #tpu.dot_dimension_numbers<[1], [0], [0], [1], [0, 0, 1, 1], [], []>} : vector<32x192xf32>, vector<192x8xf32>, vector<32x8xf32> -> vector<32x8xf32>
    %c0_8 = arith.constant 0 : index
    %c0_9 = arith.constant 0 : index
    %8 = vector.load %arg5[%c0_8, %c0_9] : memref<1x8xf32, #tpu.memory_space<vmem>>, vector<1x8xf32>
    %9 = vector.broadcast %8 : vector<1x8xf32> to vector<32x8xf32>
    %10 = arith.addf %7, %9 : vector<32x8xf32>
    %c0_10 = arith.constant 0 : index
    %c0_11 = arith.constant 0 : index
    %11 = vector.load %arg3[%c0_10, %c0_11] : memref<192x2xf32, #tpu.memory_space<vmem>>, vector<192x2xf32>
    %cst_12 = arith.constant dense<0.000000e+00> : vector<32x2xf32>
    %12 = tpu.matmul %0, %11, %cst_12 {dimension_numbers = #tpu.dot_dimension_numbers<[1], [0], [0], [1], [0, 0, 1, 1], [], []>} : vector<32x192xf32>, vector<192x2xf32>, vector<32x2xf32> -> vector<32x2xf32>
    %c0_13 = arith.constant 0 : index
    %c0_14 = arith.constant 0 : index
    %13 = vector.load %arg6[%c0_13, %c0_14] : memref<1x2xf32, #tpu.memory_space<vmem>>, vector<1x2xf32>
    %14 = vector.broadcast %13 : vector<1x2xf32> to vector<32x2xf32>
    %15 = arith.addf %12, %14 : vector<32x2xf32>
    %cst_15 = arith.constant dense<0xFF800000> : vector<32xf32>
    %16 = vector.multi_reduction <maximumf>, %5, %cst_15 [1] : vector<32x4xf32> to vector<32xf32>
    %17 = vector.shape_cast %16 : vector<32xf32> to vector<32x1xf32>
    %18 = vector.broadcast %17 : vector<32x1xf32> to vector<32x4xf32>
    %19 = arith.subf %5, %18 : vector<32x4xf32>
    %20 = math.exp %19 : vector<32x4xf32>
    %cst_16 = arith.constant dense<0.000000e+00> : vector<32xf32>
    %21 = vector.multi_reduction <add>, %20, %cst_16 [1] : vector<32x4xf32> to vector<32xf32>
    %22 = vector.shape_cast %21 : vector<32xf32> to vector<32x1xf32>
    %23 = tpu.reciprocal %22 {approx = true} : vector<32x1xf32> -> vector<32x1xf32>
    %24 = vector.broadcast %23 : vector<32x1xf32> to vector<32x4xf32>
    %25 = arith.mulf %20, %24 : vector<32x4xf32>
    %cst_17 = arith.constant dense<0xFF800000> : vector<32xf32>
    %26 = vector.multi_reduction <maximumf>, %15, %cst_17 [1] : vector<32x2xf32> to vector<32xf32>
    %27 = vector.shape_cast %26 : vector<32xf32> to vector<32x1xf32>
    %28 = vector.broadcast %27 : vector<32x1xf32> to vector<32x2xf32>
    %29 = arith.subf %15, %28 : vector<32x2xf32>
    %30 = math.exp %29 : vector<32x2xf32>
    %cst_18 = arith.constant dense<0.000000e+00> : vector<32xf32>
    %31 = vector.multi_reduction <add>, %30, %cst_18 [1] : vector<32x2xf32> to vector<32xf32>
    %32 = vector.shape_cast %31 : vector<32xf32> to vector<32x1xf32>
    %33 = tpu.reciprocal %32 {approx = true} : vector<32x1xf32> -> vector<32x1xf32>
    %34 = vector.broadcast %33 : vector<32x1xf32> to vector<32x2xf32>
    %35 = arith.mulf %30, %34 : vector<32x2xf32>
    %c0_19 = arith.constant 0 : index
    %c0_20 = arith.constant 0 : index
    %36 = vector.load %arg9[%c0_19, %c0_20] : memref<32x4xf32, #tpu.memory_space<vmem>>, vector<32x4xf32>
    tpu.vector_store %arg9[%c0_19, %c0_20], %25 {strides = array<i32>} : memref<32x4xf32, #tpu.memory_space<vmem>>, vector<32x4xf32>,
    %c0_21 = arith.constant 0 : index
    %c0_22 = arith.constant 0 : index
    %37 = vector.load %arg10[%c0_21, %c0_22] : memref<32x2xf32, #tpu.memory_space<vmem>>, vector<32x2xf32>
    tpu.vector_store %arg10[%c0_21, %c0_22], %35 {strides = array<i32>} : memref<32x2xf32, #tpu.memory_space<vmem>>, vector<32x2xf32>,
    %38 = vector.extract_strided_slice %15 {offsets = [0, 1], sizes = [32, 1], strides = [1, 1]} : vector<32x2xf32> to vector<32x1xf32>
    %39 = vector.extract_strided_slice %15 {offsets = [0, 0], sizes = [32, 1], strides = [1, 1]} : vector<32x2xf32> to vector<32x1xf32>
    %40 = arith.cmpf ogt, %38, %39 : vector<32x1xf32>
    %cst_23 = arith.constant 0.000000e+00 : f32
    %41 = vector.shape_cast %40 : vector<32x1xi1> to vector<32x1xi1>
    %42 = vector.broadcast %41 : vector<32x1xi1> to vector<32x4xi1>
    %43 = vector.broadcast %cst_23 : f32 to vector<32x4xf32>
    %44 = arith.select %42, %25, %43 : vector<32x4xi1>, vector<32x4xf32>
    %c0_24 = arith.constant 0 : index
    %c0_25 = arith.constant 0 : index
    %45 = vector.load %arg7[%c0_24, %c0_25] : memref<32x4xi32, #tpu.memory_space<vmem>>, vector<32x4xi32>
    %46 = tpu.iota {dimensions = array<i32: 1>} : vector<32x512xi32>
    %47 = vector.extract_strided_slice %45 {offsets = [0, 0], sizes = [32, 1], strides = [1, 1]} : vector<32x4xi32> to vector<32x1xi32>
    %48 = vector.broadcast %47 : vector<32x1xi32> to vector<32x512xi32>
    %49 = arith.cmpi eq, %48, %46 : vector<32x512xi32>
    %50 = vector.extract_strided_slice %44 {offsets = [0, 0], sizes = [32, 1], strides = [1, 1]} : vector<32x4xf32> to vector<32x1xf32>
    %cst_26 = arith.constant 0.000000e+00 : f32
    %51 = vector.shape_cast %50 : vector<32x1xf32> to vector<32x1xf32>
    %52 = vector.broadcast %51 : vector<32x1xf32> to vector<32x512xf32>
    %53 = vector.broadcast %cst_26 : f32 to vector<32x512xf32>
    %54 = arith.select %49, %52, %53 : vector<32x512xi1>, vector<32x512xf32>
    %55 = vector.extract_strided_slice %45 {offsets = [0, 1], sizes = [32, 1], strides = [1, 1]} : vector<32x4xi32> to vector<32x1xi32>
    %56 = vector.broadcast %55 : vector<32x1xi32> to vector<32x512xi32>
    %57 = arith.cmpi eq, %56, %46 : vector<32x512xi32>
    %58 = vector.extract_strided_slice %44 {offsets = [0, 1], sizes = [32, 1], strides = [1, 1]} : vector<32x4xf32> to vector<32x1xf32>
    %cst_27 = arith.constant 0.000000e+00 : f32
    %59 = vector.shape_cast %58 : vector<32x1xf32> to vector<32x1xf32>
    %60 = vector.broadcast %59 : vector<32x1xf32> to vector<32x512xf32>
    %61 = vector.broadcast %cst_27 : f32 to vector<32x512xf32>
    %62 = arith.select %57, %60, %61 : vector<32x512xi1>, vector<32x512xf32>
    %63 = arith.addf %54, %62 : vector<32x512xf32>
    %64 = vector.extract_strided_slice %45 {offsets = [0, 2], sizes = [32, 1], strides = [1, 1]} : vector<32x4xi32> to vector<32x1xi32>
    %65 = vector.broadcast %64 : vector<32x1xi32> to vector<32x512xi32>
    %66 = arith.cmpi eq, %65, %46 : vector<32x512xi32>
    %67 = vector.extract_strided_slice %44 {offsets = [0, 2], sizes = [32, 1], strides = [1, 1]} : vector<32x4xf32> to vector<32x1xf32>
    %cst_28 = arith.constant 0.000000e+00 : f32
    %68 = vector.shape_cast %67 : vector<32x1xf32> to vector<32x1xf32>
    %69 = vector.broadcast %68 : vector<32x1xf32> to vector<32x512xf32>
    %70 = vector.broadcast %cst_28 : f32 to vector<32x512xf32>
    %71 = arith.select %66, %69, %70 : vector<32x512xi1>, vector<32x512xf32>
    %72 = arith.addf %63, %71 : vector<32x512xf32>
    %73 = vector.extract_strided_slice %45 {offsets = [0, 3], sizes = [32, 1], strides = [1, 1]} : vector<32x4xi32> to vector<32x1xi32>
    %74 = vector.broadcast %73 : vector<32x1xi32> to vector<32x512xi32>
    %75 = arith.cmpi eq, %74, %46 : vector<32x512xi32>
    %76 = vector.extract_strided_slice %44 {offsets = [0, 3], sizes = [32, 1], strides = [1, 1]} : vector<32x4xf32> to vector<32x1xf32>
    %cst_29 = arith.constant 0.000000e+00 : f32
    %77 = vector.shape_cast %76 : vector<32x1xf32> to vector<32x1xf32>
    %78 = vector.broadcast %77 : vector<32x1xf32> to vector<32x512xf32>
    %79 = vector.broadcast %cst_29 : f32 to vector<32x512xf32>
    %80 = arith.select %75, %78, %79 : vector<32x512xi1>, vector<32x512xf32>
    %81 = arith.addf %72, %80 : vector<32x512xf32>
    %82 = tpu.transpose %10, [1, 0] : vector<32x8xf32> -> vector<8x32xf32>
    %cst_30 = arith.constant dense<0.000000e+00> : vector<8x512xf32>
    %83 = tpu.matmul %82, %81, %cst_30 {dimension_numbers = #tpu.dot_dimension_numbers<[1], [0], [0], [1], [0, 0, 1, 1], [], []>} : vector<8x32xf32>, vector<32x512xf32>, vector<8x512xf32> -> vector<8x512xf32>
    %c0_31 = arith.constant 0 : index
    %c0_32 = arith.constant 0 : index
    %84 = vector.load %arg8[%c0_31, %c0_32] : memref<8x512xf32, #tpu.memory_space<vmem>>, vector<8x512xf32>
    tpu.vector_store %arg8[%c0_31, %c0_32], %83 {strides = array<i32>} : memref<8x512xf32, #tpu.memory_space<vmem>>, vector<8x512xf32>,
    return
  }
}

</mosaic_0001>

<bundles_post_ra>
// kernel: forward.1
= control target key start
LH: loop header
LB: loop body
LE: loop exit
PB: predicated region body
PF: predicated region fallthrough
CT: control target
= control target key end

     0   :  { %vm68_vm0 = vcmask 523264   ;;  %vm311_vm1 = vcmask 31744   ;;  %vm356_vm2 = vcmask 15360   ;;  %s1794_s1 = inlined_call_operand.vmem [shape: f32[192,4], index: 1, kind: input, shape index: {}]   ;;  %s1795_s2 = inlined_call_operand.vmem [shape: f32[192,8], index: 2, kind: input, shape index: {}]   ;;  %s1796_s0 = inlined_call_operand.vmem [shape: f32[32,192], index: 0, kind: input, shape index: {}]   ;;  %s1797_s3 = inlined_call_operand.vmem [shape: f32[192,2], index: 3, kind: input, shape index: {}]   ;;  %s1798_s4 = inlined_call_operand.vmem [shape: f32[1,4], index: 4, kind: input, shape index: {}]   ;;  %s1799_s5 = inlined_call_operand.vmem [shape: f32[1,8], index: 5, kind: input, shape index: {}]   ;;  %s1800_s7 = inlined_call_operand.vmem [shape: s32[32,4], index: 7, kind: input, shape index: {}]   ;;  %s1801_s6 = inlined_call_operand.vmem [shape: f32[1,2], index: 6, kind: input, shape index: {}]   ;;  %s1802_s9 = inlined_call_operand.vmem [shape: f32[32,4], index: 9, kind: output, shape index: {1}]   ;;  %s1803_s10 = inlined_call_operand.vmem [shape: f32[32,2], index: 10, kind: output, shape index: {2}]   ;;  %s1804_s8 = inlined_call_operand.vmem [shape: f32[8,512], index: 8, kind: output, shape index: {0}]  }
   0x1   :  { %v55_v0 = vld [vmem:[%s1794_s1 + $0x78] sm:$0xff]  ;;  %v54_v2 = vld [vmem:[%s1794_s1 + $0x70] sm:$0xff]  ;;  %v53_v5 = vld [vmem:[%s1794_s1 + $0x68] sm:$0xff] }
   0x2   :  { %v162_v1 = vld [vmem:[%s1795_s2 + $0xb8] sm:$0xff]  ;;  %81 = vmatpush.msra.mxu0 %v55_v0  ;;  %v161_v3 = vld [vmem:[%s1795_s2 + $0xb0] sm:$0xff]  ;;  %v160_v7 = vld [vmem:[%s1795_s2 + $0xa8] sm:$0xff] }
   0x3   :  { %204 = vmatpush.msra.mxu3 %v162_v1  ;;  %v154_v4 = vld [vmem:[%s1795_s2 + $0x78] sm:$0xff]  ;;  %v153_v8 = vld [vmem:[%s1795_s2 + $0x70] sm:$0xff]  ;;  %v52_v10 = vld [vmem:[%s1794_s1 + $0x60] sm:$0xff] }
   0x4   :  { %167 = vmatpush.msra.mxu2 %v154_v4  ;;  %v63_v6 = vld [vmem:[%s1794_s1 + $0xb8] sm:$0xff]  ;;  %82 = vmatpush.msra.mxu0 %v54_v2  ;;  %v62_v9 = vld [vmem:[%s1794_s1 + $0xb0] sm:$0xff]  ;;  %v159_v11 = vld [vmem:[%s1795_s2 + $0xa0] sm:$0xff] }
   0x5   :  { %205 = vmatpush.msra.mxu3 %v161_v3  ;;  %118 = vmatpush.msra.mxu1 %v63_v6  ;;  %v152_v12 = vld [vmem:[%s1795_s2 + $0x68] sm:$0xff]  ;;  %v151_v14 = vld [vmem:[%s1795_s2 + $0x60] sm:$0xff]  ;;  %v51_v15 = vld [vmem:[%s1794_s1 + $0x58] sm:$0xff] }
   0x6   :  { %168 = vmatpush.msra.mxu2 %v153_v8  ;;  %83 = vmatpush.msra.mxu0 %v53_v5  ;;  %v61_v13 = vld [vmem:[%s1794_s1 + $0xa8] sm:$0xff]  ;;  %v158_v16 = vld [vmem:[%s1795_s2 + $0x98] sm:$0xff]  ;;  %v60_v17 = vld [vmem:[%s1794_s1 + $0xa0] sm:$0xff] }
   0x7   :  { %206 = vmatpush.msra.mxu3 %v160_v7  ;;  %119 = vmatpush.msra.mxu1 %v62_v9  ;;  %v150_v18 = vld [vmem:[%s1795_s2 + $0x58] sm:$0xff]  ;;  %v50_v19 = vld [vmem:[%s1794_s1 + $0x50] sm:$0xff]  ;;  %v49_v23 = vld [vmem:[%s1794_s1 + $0x48] sm:$0xff]  ;;  %v971_v7 = vmov 1  }
   0x8   :  { %169 = vmatpush.msra.mxu2 %v152_v12  ;;  %84 = vmatpush.msra.mxu0 %v52_v10  ;;  %v157_v20 = vld [vmem:[%s1795_s2 + $0x90] sm:$0xff]  ;;  %v59_v21 = vld [vmem:[%s1794_s1 + $0x98] sm:$0xff]  ;;  %v156_v24 = vld [vmem:[%s1795_s2 + $0x88] sm:$0xff] }
   0x9   :  { %207 = vmatpush.msra.mxu3 %v159_v11  ;;  %120 = vmatpush.msra.mxu1 %v61_v13  ;;  %v149_v22 = vld [vmem:[%s1795_s2 + $0x50] sm:$0xff]  ;;  %v148_v26 = vld [vmem:[%s1795_s2 + $0x48] sm:$0xff]  ;;  %v48_v27 = vld [vmem:[%s1794_s1 + $0x40] sm:$0xff] }
   0xa   :  { %170 = vmatpush.msra.mxu2 %v151_v14  ;;  %85 = vmatpush.msra.mxu0 %v51_v15  ;;  %v58_v25 = vld [vmem:[%s1794_s1 + $0x90] sm:$0xff]  ;;  %v155_v28 = vld [vmem:[%s1795_s2 + $0x80] sm:$0xff]  ;;  %v1121_v29 = vld [vmem:[%s1796_s0 + $0x8] sm:$0xff]  ;;  %v972_v15 = vmov 0  }
   0xb   :  { %208 = vmatpush.msra.mxu3 %v158_v16  ;;  %121 = vmatpush.msra.mxu1 %v60_v17  ;;  %v57_v30 = vld [vmem:[%s1794_s1 + $0x88] sm:$0xff]  ;;  %v47_v31 = vld [vmem:[%s1794_s1 + $0x38] sm:$0xff]  ;;  %v147_v32 = vld [vmem:[%s1795_s2 + $0x40] sm:$0xff] }
   0xc   :  { %171 = vmatpush.msra.mxu2 %v150_v18  ;;  %86 = vmatpush.msra.mxu0 %v50_v19  ;;  %v56_v33 = vld [vmem:[%s1794_s1 + $0x80] sm:$0xff]  ;;  %v46_v34 = vld [vmem:[%s1794_s1 + $0x30] sm:$0xff]  ;;  %v146_v35 = vld [vmem:[%s1795_s2 + $0x38] sm:$0xff]  ;;  %v973_v18 = vmov 2  }
   0xd   :  { %209 = vmatpush.msra.mxu3 %v157_v20  ;;  %122 = vmatpush.msra.mxu1 %v59_v21  ;;  %v240_v36 = vld [vmem:[%s1797_s3 + $0x78] sm:$0xff]  ;;  %v45_v37 = vld [vmem:[%s1794_s1 + $0x28] sm:$0xff]  ;;  %v145_v38 = vld [vmem:[%s1795_s2 + $0x30] sm:$0xff] }
   0xe   :  { %172 = vmatpush.msra.mxu2 %v149_v22  ;;  %87 = vmatpush.msra.mxu0 %v49_v23  ;;  %v239_v39 = vld [vmem:[%s1797_s3 + $0x70] sm:$0xff]  ;;  %v248_v40 = vld [vmem:[%s1797_s3 + $0xb8] sm:$0xff]  ;;  %v44_v41 = vld [vmem:[%s1794_s1 + $0x20] sm:$0xff]  ;;  %v974_v23 = vmov 3  }
   0xf   :  { %210 = vmatpush.msra.mxu3 %v156_v24  ;;  %123 = vmatpush.msra.mxu1 %v58_v25  ;;  %v247_v42 = vld [vmem:[%s1797_s3 + $0xb0] sm:$0xff]  ;;  %v144_v43 = vld [vmem:[%s1795_s2 + $0x28] sm:$0xff]  ;;  %v1172_v44 = vld [vmem:[%s1796_s0 + $0x18] sm:$0xff] }
  0x10   :  { %173 = vmatpush.msra.mxu2 %v148_v26  ;;  %88 = vmatpush.msra.mxu0 %v48_v27  ;;  %v43_v45 = vld [vmem:[%s1794_s1 + $0x18] sm:$0xff]  ;;  %v238_v46 = vld [vmem:[%s1797_s3 + $0x68] sm:$0xff]  ;;  %v143_v47 = vld [vmem:[%s1795_s2 + $0x20] sm:$0xff] }
  0x11   :  { %211 = vmatpush.msra.mxu3 %v155_v28  ;;  %124 = vmatpush.msra.mxu1 %v57_v30  ;;  %v246_v48 = vld [vmem:[%s1797_s3 + $0xa8] sm:$0xff]  ;;  %v42_v49 = vld [vmem:[%s1794_s1 + $0x10] sm:$0xff]  ;;  %v237_v50 = vld [vmem:[%s1797_s3 + $0x60] sm:$0xff] }
  0x12   :  { %890 = vmatmul.msk.f32.vlgmr.msra.gmra.mxu3 %vm68_vm0, %v1121_v29  ;;  %89 = vmatpush.msra.mxu0 %v47_v31  ;;  %v142_v51 = vld [vmem:[%s1795_s2 + $0x18] sm:$0xff]  ;;  %v41_v52 = vld [vmem:[%s1794_s1 + $0x8] sm:$0xff]  ;;  %v141_v54 = vld [vmem:[%s1795_s2 + $0x10] sm:$0xff] }
  0x13   :  { %174 = vmatpush.msra.mxu2 %v147_v32  ;;  %125 = vmatpush.msra.mxu1 %v56_v33  ;;  %v236_v53 = vld [vmem:[%s1797_s3 + $0x58] sm:$0xff]  ;;  %v245_v55 = vld [vmem:[%s1797_s3 + $0xa0] sm:$0xff]  ;;  %v235_v57 = vld [vmem:[%s1797_s3 + $0x50] sm:$0xff] }
  0x14   :  { %90 = vmatpush.msra.mxu0 %v46_v34  ;;  %886 = vmatmul.msk.f32.vlgmr.msra.gmra.mxu1 %vm68_vm0, %v1121_v29  ;;  %v40_v56 = vld [vmem:[%s1794_s1] sm:$0xff]  ;;  %v140_v59 = vld [vmem:[%s1795_s2 + $0x8] sm:$0xff]  ;;  %v244_v63 = vld [vmem:[%s1797_s3 + $0x98] sm:$0xff] }
  0x15   :  { %175 = vmatpush.msra.mxu2 %v146_v35  ;;  %253 = vmatpush.msrb.mxu1 %v240_v36  ;;  %v1220_v58 = vld [vmem:[%s1796_s0] sm:$0xff]  ;;  %v1228_v60 = vld [vmem:[%s1796_s0 + $0x28] sm:$0xff]  ;;  %v243_v1 = vld [vmem:[%s1797_s3 + $0x90] sm:$0xff] }
  0x16   :  { %91 = vmatpush.msra.mxu0 %v45_v37  ;;  %290 = vmatpush.msrb.mxu3 %v248_v40  ;;  %v234_v61 = vld [vmem:[%s1797_s3 + $0x48] sm:$0xff]  ;;  %v139_v62 = vld [vmem:[%s1795_s2] sm:$0xff]  ;;  %v232_v2 = vld [vmem:[%s1797_s3 + $0x38] sm:$0xff] }
  0x17   :  { %176 = vmatpush.msra.mxu2 %v145_v38  ;;  %254 = vmatpush.msrb.mxu1 %v239_v39  ;;  %v233_v0 = vld [vmem:[%s1797_s3 + $0x40] sm:$0xff]  ;;  %v242_v3 = vld [vmem:[%s1797_s3 + $0x88] sm:$0xff]  ;;  %v231_v4 = vld [vmem:[%s1797_s3 + $0x30] sm:$0xff] }
  0x18   :  { %92 = vmatpush.msra.mxu0 %v44_v41  ;;  %291 = vmatpush.msrb.mxu3 %v247_v42  ;;  %v34_v5 = vld [vmem:[%s1796_s0 + $0x10] sm:$0xff]  ;;  %v241_v6 = vld [vmem:[%s1797_s3 + $0x80] sm:$0xff]  ;;  %v39_v8 = vld [vmem:[%s1796_s0 + $0x38] sm:$0xff] }
  0x19   :  { %177 = vmatpush.msra.mxu2 %v144_v43  ;;  %255 = vmatpush.msrb.mxu1 %v238_v46  ;;  %v230_v9 = vld [vmem:[%s1797_s3 + $0x28] sm:$0xff]  ;;  %v229_v10 = vld [vmem:[%s1797_s3 + $0x20] sm:$0xff]  ;;  %v456_v11 = vld [vmem:[%s1800_s7 + $0x18] sm:$0xff] }
  0x1a   :  { %891 = vmatmul.msk.f32.gmra.mxu3 %vm68_vm0, %v1172_v44  ;;  %93 = vmatpush.msra.mxu0 %v43_v45  ;;  %v228_v12 = vld [vmem:[%s1797_s3 + $0x18] sm:$0xff]  ;;  %v227_v13 = vld [vmem:[%s1797_s3 + $0x10] sm:$0xff]  ;;  %v36_v14 = vld [vmem:[%s1796_s0 + $0x20] sm:$0xff] }
  0x1b   :  { %178 = vmatpush.msra.mxu2 %v143_v47  ;;  %292 = vmatpush.msrb.mxu3 %v246_v48  ;;  %v226_v16 = vld [vmem:[%s1797_s3 + $0x8] sm:$0xff]  ;;  %v455_v19 = vld [vmem:[%s1800_s7 + $0x10] sm:$0xff]  ;;  %v225_v20 = vld [vmem:[%s1797_s3] sm:$0xff] }
  0x1c   :  { %94 = vmatpush.msra.mxu0 %v42_v49  ;;  %256 = vmatpush.msrb.mxu1 %v237_v50  ;;  %v1297_v17 = vld [vmem:[%s1800_s7 + $0x8] sm:$0xff]  ;;  %v38_v21 = vld [vmem:[%s1796_s0 + $0x30] sm:$0xff]  ;;  %v1321_v22 = vld [vmem:[%s1800_s7] sm:$0xff] }
  0x1d   :  { %887 = vmatmul.msk.f32.gmra.mxu1 %vm68_vm0, %v1172_v44  ;;  %179 = vmatpush.msra.mxu2 %v142_v51  ;;  %v936_v27 = vld [vmem:[%s1798_s4] ss:$0 sm:$0xff] }
  0x1e   :  { %95 = vmatpush.msra.mxu0 %v41_v52  ;;  %257 = vmatpush.msrb.mxu1 %v236_v53  ;;  %v938_v43 = vld [vmem:[%s1801_s6] ss:$0 sm:$0xff]  ;;  %s975_s6 = smov 1  }
  0x1f   :  { %180 = vmatpush.msra.mxu2 %v141_v54  ;;  %293 = vmatpush.msrb.mxu3 %v245_v55 }
  0x20   :  { %96 = vmatpush.msra.mxu0 %v40_v56  ;;  %258 = vmatpush.msrb.mxu1 %v235_v57 }
  0x21   :  { %97 = vmatmul.f32.vlgmr.msra.gmra.mxu0 %v1220_v58  ;;  %181 = vmatpush.msra.mxu2 %v140_v59 }
  0x22   :  { %892 = vmatmul.msk.f32.gmra.mxu3 %vm68_vm0, %v1228_v60  ;;  %259 = vmatpush.msrb.mxu1 %v234_v61 }
  0x23   :  { %182 = vmatpush.msra.mxu2 %v139_v62  ;;  %294 = vmatpush.msrb.mxu3 %v244_v63 }
  0x24   :  { %183 = vmatmul.f32.vlgmr.msra.gmra.mxu2 %v1220_v58  ;;  %260 = vmatpush.msrb.mxu1 %v233_v0 }
  0x25   :  { %888 = vmatmul.msk.f32.gmra.mxu1 %vm68_vm0, %v1228_v60  ;;  %295 = vmatpush.msrb.mxu3 %v243_v1 }
  0x26   :  { %261 = vmatpush.msrb.mxu1 %v232_v2  ;;  %909 = vset.pattern.permute.xlu0 %v971_v7 }
  0x27   :  { %296 = vmatpush.msrb.mxu3 %v242_v3  ;;  %536 = vperm.xlu0 %909, %v456_v11  }
  0x28   :  { %262 = vmatpush.msrb.mxu1 %v231_v4  ;;  %908 = vset.pattern.permute.xlu2 %v972_v15 }
  0x29   :  { %100 = vmatmul.f32.gmra.mxu0 %v34_v5  ;;  %297 = vmatpush.msrb.mxu3 %v241_v6 }
  0x2a   :  { %893 = vmatmul.msk.f32.gmra.mxu3 %vm68_vm0, %v39_v8  ;;  %263 = vmatpush.msrb.mxu1 %v230_v9 }
  0x2b   :  { %472 = vperm.xlu2 %908, %v456_v11   ;;  %915 = vset.pattern.permute.xlu1 %v973_v18 }
  0x2c   :  { %186 = vmatmul.f32.gmra.mxu2 %v34_v5  ;;  %264 = vmatpush.msrb.mxu1 %v229_v10 }
  0x2d   :  { %889 = vmatmul.msk.f32.gmra.mxu1 %vm68_vm0, %v39_v8  ;;  %606 = vperm.xlu1 %915, %v1297_v17  }
  0x2e   :  { %265 = vmatpush.msrb.mxu1 %v228_v12 }
  0x2f   :  { %533 = vperm.xlu0 %909, %v455_v19  }
  0x30   :  { %266 = vmatpush.msrb.mxu1 %v227_v13 }
  0x31   :  { %103 = vmatmul.f32.gmra.mxu0 %v36_v14 }
  0x32   :  { %894 = vmatmul.msk.f32.vlgmr.msrb.gmra.mxu3 %vm68_vm0, %v1121_v29  ;;  %267 = vmatpush.msrb.mxu1 %v226_v16 }
  0x33   :  { %469 = vperm.xlu2 %908, %v455_v19  }
  0x34   :  { %189 = vmatmul.f32.gmra.mxu2 %v36_v14  ;;  %268 = vmatpush.msrb.mxu1 %v225_v20 }
  0x35   :  { %269 = vmatmul.f32.vlgmr.msrb.gmra.mxu1 %v1220_v58  ;;  %918 = vset.pattern.permute.xlu1 %v971_v7 }
  0x37   :  { %530 = vperm.xlu0 %909, %v1297_v17  }
  0x39   :  { %106 = vmatmul.f32.gmra.mxu0 %v38_v21 }
  0x3a   :  { %895 = vmatmul.msk.f32.gmra.mxu3 %vm68_vm0, %v1172_v44 }
  0x3b   :  { %910 = vset.pattern.permute.xlu2 %v973_v18 }
  0x3c   :  { %192 = vmatmul.f32.gmra.mxu2 %v38_v21  ;;  %612 = vperm.xlu2 %910, %v456_v11  }
  0x3d   :  { %272 = vmatmul.f32.gmra.mxu1 %v34_v5 }
  0x3f   :  { %527 = vperm.xlu0 %909, %v1321_v22  }
  0x42   :  { %896 = vmatmul.msk.f32.gmra.mxu3 %vm68_vm0, %v1228_v60 }
  0x44   :  { %911 = vset.pattern.permute.xlu2 %v972_v15 }
  0x45   :  { %275 = vmatmul.f32.gmra.mxu1 %v36_v14  ;;  %466 = vperm.xlu2 %911, %v1297_v17  }
  0x4a   :  { %897 = vmatmul.msk.f32.gmra.mxu3 %vm68_vm0, %v39_v8 }
  0x4d   :  { %278 = vmatmul.f32.gmra.mxu1 %v38_v21  ;;  %912 = vset.pattern.permute.xlu2 %v973_v18 }
  0x4e   :  { %609 = vperm.xlu2 %912, %v455_v19  }
  0x56   :  { %913 = vset.pattern.permute.xlu2 %v974_v23 }
  0x57   :  { %688 = vperm.xlu2 %913, %v456_v11  }
  0x5f   :  { %914 = vset.pattern.permute.xlu2 %v972_v15 }
  0x60   :  { %463 = vperm.xlu2 %914, %v1321_v22  }
  0x68   :  { %916 = vset.pattern.permute.xlu2 %v974_v23 }
  0x69   :  { %685 = vperm.xlu2 %916, %v455_v19  }
  0x71   :  { %917 = vset.pattern.permute.xlu2 %v971_v7 }
  0x85   :  { %v1379_v3 = vpop.permute.xlu2 %472 }
  0x8d   :  { %v1381_v4 = vpop.permute.xlu2 %469 }
  0x91   :  { %v127_v24 = vpop.f32.mrf.mxu1 }
  0x95   :  { %v1335_v25 = vpop.f32.mrf.mxu3 }
  0x96   :  { %v1385_v6 = vpop.permute.xlu2 %612 }
  0x99   :  { %v1383_v5 = vpop.permute.xlu0 %536 }
  0x9a   :  { %v130_v26 = vpop.f32.mrf.mxu1 }
  0x9d   :  { %v1340_v28 = vpop.f32.mrf.mxu3 }
  0x9e   :  { %v98_v29 = vpop.f32.mrf.mxu0 }
  0x9f   :  { %v99_v30 = vadd.f32 %v936_v27, %v98_v29  ;;  %v1393_v11 = vpop.permute.xlu2 %466 }
  0xa1   :  { %v1342_v31 = vadd.f32 %v127_v24, %v99_v30  ;;  %v1391_v10 = vpop.permute.xlu0 %533 }
  0xa2   :  { %v133_v32 = vpop.f32.mrf.mxu1 }
  0xa3   :  { %v312_v33 = vsel %vm311_vm1, %v1342_v31, -inf }
  0xa4   :  { %313 = vmax.xlane.f32.xlu0 %v312_v33 }
  0xa5   :  { %v1346_v34 = vpop.f32.mrf.mxu3 }
  0xa6   :  { %v101_v35 = vpop.f32.mrf.mxu0 }
  0xa7   :  { %v102_v36 = vadd.f32 %v936_v27, %v101_v35 }
  0xa8   :  { %v1399_v14 = vpop.permute.xlu2 %609 }
  0xa9   :  { %v1348_v37 = vadd.f32 %v130_v26, %v102_v36  ;;  %v1397_v13 = vpop.permute.xlu0 %530 }
  0xaa   :  { %v136_v38 = vpop.f32.mrf.mxu1 }
  0xab   :  { %v315_v39 = vsel %vm311_vm1, %v1348_v37, -inf }
  0xac   :  { %316 = vmax.xlane.f32.xlu0 %v315_v39 }
  0xad   :  { %v1352_v40 = vpop.f32.mrf.mxu3 }
  0xae   :  { %v104_v41 = vpop.f32.mrf.mxu0 }
  0xaf   :  { %v105_v42 = vadd.f32 %v936_v27, %v104_v41 }
  0xb1   :  { %v1357_v44 = vadd.f32 %v133_v32, %v105_v42  ;;  %v1401_v16 = vpop.permute.xlu0 %527  ;;  %v1403_v19 = vpop.permute.xlu2 %688 }
  0xb2   :  { %v270_v45 = vpop.f32.mrf.mxu1 }
  0xb3   :  { %v271_v46 = vadd.f32 %v938_v43, %v270_v45  ;;  %v318_v47 = vsel %vm311_vm1, %v1357_v44, -inf }
  0xb4   :  { %319 = vmax.xlane.f32.xlu1 %v318_v47 }
  0xb5   :  { %v299_v48 = vpop.f32.mrf.mxu3 }
  0xb6   :  { %v1361_v49 = vadd.f32 %v299_v48, %v271_v46  ;;  %v107_v50 = vpop.f32.mrf.mxu0 }
  0xb7   :  { %v108_v51 = vadd.f32 %v936_v27, %v107_v50  ;;  %v1408_v27 = vpop.permute.xlu1 %606 }
  0xb8   :  { %v357_v52 = vsel %vm356_vm2, %v1361_v49, -inf }
  0xb9   :  { %358 = vmax.xlane.f32.xlu2 %v357_v52  ;;  %v1365_v53 = vadd.f32 %v136_v38, %v108_v51 }
  0xba   :  { %v273_v54 = vpop.f32.mrf.mxu1  ;;  %v1406_v24 = vpop.permute.xlu2 %463 }
  0xbb   :  { %v321_v55 = vsel %vm311_vm1, %v1365_v53, -inf  ;;  %v274_v59 = vadd.f32 %v938_v43, %v273_v54 }
  0xbc   :  { %322 = vmax.xlane.f32.xlu1 %v321_v55 }
  0xbd   :  { %v302_v56 = vpop.f32.mrf.mxu3 }
  0xbe   :  { %v1370_v62 = vadd.f32 %v302_v56, %v274_v59 }
  0xc0   :  { %413 = vrot.lane.b32.xlu0 %v1361_v49, %s975_s6  ;;  %v360_v9 = vsel %vm356_vm2, %v1370_v62, -inf }
  0xc2   :  { %v276_v57 = vpop.f32.mrf.mxu1 }
  0xc3   :  { %v277_v63 = vadd.f32 %v938_v43, %v276_v57  ;;  %v1415_v36 = vpop.permute.xlu2 %685 }
  0xc5   :  { %v305_v58 = vpop.f32.mrf.mxu3 }
  0xc6   :  { %v1375_v2 = vadd.f32 %v305_v58, %v277_v63 }
  0xc8   :  { %v363_v12 = vsel %vm356_vm2, %v1375_v2, -inf }
  0xca   :  { %v279_v60 = vpop.f32.mrf.mxu1 }
  0xcb   :  { %v280_v61 = vadd.f32 %v938_v43, %v279_v60 }
  0xcd   :  { %v308_v0 = vpop.f32.mrf.mxu3 }
  0xce   :  { %v1372_v1 = vadd.f32 %v308_v0, %v280_v61 }
  0xd0   :  { %419 = vrot.lane.b32.xlu0 %v1372_v1, %s975_s6  ;;  %v366_v8 = vsel %vm356_vm2, %v1372_v1, -inf }
  0xd1   :  { %415 = vrot.lane.b32.xlu2 %v1370_v62, %s975_s6 }
  0xd5   :  { %417 = vrot.lane.b32.xlu1 %v1375_v2, %s975_s6 }
  0xfa   :  { %361 = vmax.xlane.f32.xlu2 %v360_v9  ;;  %367 = vmax.xlane.f32.xlu0 %v366_v8 }
  0xff   :  { %364 = vmax.xlane.f32.xlu1 %v363_v12 }
 0x117   :  { %v314_v20 = vpop.xlane.xlu0 %313 }
 0x118   :  { %v324_v21 = vsub.f32 %v1342_v31, %v314_v20 }
 0x11a   :  { %v328_v26 = vmul.f32 1.442695, %v324_v21 }
 0x11c   :  { %939 = vpow2.f32 %v328_v26 }
 0x11f   :  { %v317_v29 = vpop.xlane.xlu0 %316 }
 0x120   :  { %v325_v30 = vsub.f32 %v1348_v37, %v317_v29 }
 0x122   :  { %v1411_v32 = vpop.eup %939  ;;  %v330_v33 = vmul.f32 1.442695, %v325_v30 }
 0x123   :  { %v336_v35 = vsel %vm311_vm1, %v1411_v32, 0.0 }
 0x124   :  { %941 = vpow2.f32 %v330_v33  ;;  %337 = vadd.xlane.f32.xlu2 %v336_v35 }
 0x127   :  { %v320_v31 = vpop.xlane.xlu1 %319 }
 0x128   :  { %v326_v38 = vsub.f32 %v1357_v44, %v320_v31 }
 0x12a   :  { %v1418_v39 = vpop.eup %941  ;;  %v332_v41 = vmul.f32 1.442695, %v326_v38 }
 0x12b   :  { %v339_v42 = vsel %vm311_vm1, %v1418_v39, 0.0 }
 0x12c   :  { %943 = vpow2.f32 %v332_v41  ;;  %v359_v37 = vpop.xlane.xlu2 %358  ;;  %340 = vadd.xlane.f32.xlu2 %v339_v42 }
 0x12d   :  { %v369_v56 = vsub.f32 %v1361_v49, %v359_v37 }
 0x12f   :  { %v323_v52 = vpop.xlane.xlu1 %322  ;;  %v373_v58 = vmul.f32 1.442695, %v369_v56 }
 0x130   :  { %v327_v54 = vsub.f32 %v1365_v53, %v323_v52 }
 0x132   :  { %v1422_v43 = vpop.eup %943  ;;  %v414_v47 = vpop.permute.xlu0 %413  ;;  %v334_v55 = vmul.f32 1.442695, %v327_v54 }
 0x133   :  { %v342_v45 = vsel %vm311_vm1, %v1422_v43, 0.0  ;;  %vm425_vm4 = vcmp.gt.f32.partialorder %v1361_v49, %v414_v47 }
 0x134   :  { %v416_v46 = vpop.permute.xlu2 %415  ;;  %343 = vadd.xlane.f32.xlu0 %v342_v45  ;;  %v429_v50 = vsel %vm425_vm4, 1, %v972_v15  ;;  %945 = vpow2.f32 %v334_v55 }
 0x135   :  { %vm426_vm3 = vcmp.gt.f32.partialorder %v1370_v62, %v416_v46  ;;  %947 = vpow2.f32 %v373_v58 }
 0x136   :  { %v430_v44 = vsel %vm426_vm3, 1, %v972_v15 }
 0x137   :  { %437 = vperm.xlu1 %918, %v430_v44  }
 0x13a   :  { %v1436_v57 = vpop.eup %945 }
 0x13b   :  { %v345_v59 = vsel %vm311_vm1, %v1436_v57, 0.0  ;;  %v1440_v60 = vpop.eup %947 }
 0x13c   :  { %v381_v61 = vsel %vm356_vm2, %v1440_v60, 0.0 }
 0x13f   :  { %920 = vset.pattern.permute.xlu1 %v974_v23 }
 0x142   :  { %v420_v48 = vpop.permute.xlu0 %419 }
 0x143   :  { %vm428_vm5 = vcmp.gt.f32.partialorder %v1372_v1, %v420_v48 }
 0x144   :  { %434 = vperm.xlu2 %917, %v429_v50   ;;  %v432_v51 = vsel %vm428_vm5, 1, %v972_v15 }
 0x147   :  { %v418_v53 = vpop.permute.xlu1 %417 }
 0x148   :  { %443 = vperm.xlu0 %909, %v432_v51   ;;  %vm427_vm6 = vcmp.gt.f32.partialorder %v1375_v2, %v418_v53  ;;  %v937_v53 = vld [vmem:[%s1799_s5] ss:$0 sm:$0xff] }
 0x149   :  { %v431_v49 = vsel %vm427_vm6, 1, %v972_v15 }
 0x150   :  { %923 = vset.pattern.permute.xlu0 %v972_v15 }
 0x161   :  { %346 = vadd.xlane.f32.xlu1 %v345_v59 }
 0x16d   :  { %382 = vadd.xlane.f32.xlu2 %v381_v61  ;;  %v362_v63 = vpop.xlane.xlu2 %361  ;;  %v1453_v26 = vpop.xlane.xlu0 %367 }
 0x16e   :  { %v370_v0 = vsub.f32 %v1370_v62, %v362_v63  ;;  %v457_v63 = vlaneseq }
 0x170   :  { %v375_v8 = vmul.f32 1.442695, %v370_v0 }
 0x172   :  { %v365_v9 = vpop.xlane.xlu1 %364 }
 0x173   :  { %v371_v12 = vsub.f32 %v1375_v2, %v365_v9  ;;  %v1520_v9 = vand.u32 127, %v457_v63 }
 0x175   :  { %v377_v21 = vmul.f32 1.442695, %v371_v12  ;;  %vm542_vm11 = vcmp.eq.s32.totalorder %v1397_v13, %v1520_v9  ;;  %vm478_vm15 = vcmp.eq.s32.totalorder %v1393_v11, %v1520_v9  ;;  %vm618_vm6 = vcmp.eq.s32.totalorder %v1408_v27, %v1520_v9 }
 0x17a   :  { %682 = vperm.xlu1 %920, %v1297_v17  }
 0x182   :  { %921 = vset.pattern.permute.xlu1 %v972_v15 }
 0x185   :  { %440 = vperm.xlu2 %917, %v431_v49  }
 0x18d   :  { %919 = vset.pattern.permute.xlu2 %v973_v18 }
 0x18e   :  { %603 = vperm.xlu2 %919, %v1321_v22  }
 0x196   :  { %922 = vset.pattern.permute.xlu2 %v971_v7 }
 0x197   :  { %v338_v17 = vpop.xlane.xlu2 %337 }
 0x198   :  { %949 = vrcp.f32 %v338_v17 }
 0x199   :  { %951 = vpow2.f32 %v375_v8 }
 0x19e   :  { %v950_v20 = vpop.eup %949 }
 0x19f   :  { %v341_v29 = vpop.xlane.xlu2 %340  ;;  %v352_v30 = vmul.f32 %v950_v20, %v1411_v32  ;;  %v1456_v33 = vpop.eup %951 }
 0x1a0   :  { %953 = vrcp.f32 %v341_v29  ;;  %v384_v62 = vsel %vm356_vm2, %v1456_v33, 0.0  ;;  %v1528_v29 = vadd.s32 128, %v1520_v9 }
 0x1a1   :  { %401 = vst.msk [vmem:[%s1802_s9] sm:$0xff] %vm311_vm1, %v352_v30  ;;  %955 = vpow2.f32 %v377_v21 }
 0x1a2   :  { %vm543_vm12 = vcmp.eq.s32.totalorder %v1397_v13, %v1528_v29  ;;  %vm479_vm0 = vcmp.eq.s32.totalorder %v1393_v11, %v1528_v29 }
 0x1a4   :  { %385 = vadd.xlane.f32.xlu1 %v384_v62 }
 0x1a6   :  { %v954_v2 = vpop.eup %953 }
 0x1a7   :  { %v435_v35 = vpop.permute.xlu2 %434  ;;  %v344_v31 = vpop.xlane.xlu0 %343  ;;  %v353_v38 = vmul.f32 %v954_v2, %v1418_v39 }
 0x1a8   :  { %v1465_v41 = vpop.eup %955  ;;  %vm445_vm7 = vcmp.eq.s32.totalorder %v435_v35, 1  ;;  %957 = vrcp.f32 %v344_v31 }
 0x1a9   :  { %v449_v32 = vsel %vm445_vm7, %v352_v30, 0.0  ;;  %v438_v42 = vpop.permute.xlu1 %437  ;;  %402 = vst.msk [vmem:[%s1802_s9 + $0x8] sm:$0xff] %vm311_vm1, %v353_v38  ;;  %v387_v45 = vsel %vm356_vm2, %v1465_v41, 0.0  ;;  %v1531_v30 = vadd.s32 256, %v1520_v9  ;;  %vm619_vm7 = vcmp.eq.s32.totalorder %v1408_v27, %v1528_v29 }
 0x1aa   :  { %vm446_vm8 = vcmp.eq.s32.totalorder %v438_v42, 1  ;;  %555 = vperm.xlu2 %922, %v449_v32  }
 0x1ab   :  { %v450_v37 = vsel %vm446_vm8, %v353_v38, 0.0  ;;  %vm544_vm13 = vcmp.eq.s32.totalorder %v1397_v13, %v1531_v30  ;;  %vm620_vm4 = vcmp.eq.s32.totalorder %v1408_v27, %v1531_v30  ;;  %vm482_vm8 = vcmp.eq.s32.totalorder %v1381_v4, %v1520_v9 }
 0x1ac   :  { %388 = vadd.xlane.f32.xlu1 %v387_v45  ;;  %497 = vperm.xlu0 %923, %v450_v37  }
 0x1ae   :  { %v958_v39 = vpop.eup %957 }
 0x1af   :  { %v354_v46 = vmul.f32 %v958_v39, %v1422_v43 }
 0x1b1   :  { %403 = vst.msk [vmem:[%s1802_s9 + $0x10] sm:$0xff] %vm311_vm1, %v354_v46 }
 0x1b4   :  { %925 = vset.pattern.permute.xlu0 %v973_v18 }
 0x1b5   :  { %635 = vperm.xlu0 %925, %v450_v37  }
 0x1ba   :  { %v444_v55 = vpop.permute.xlu0 %443 }
 0x1bb   :  { %vm448_vm10 = vcmp.eq.s32.totalorder %v444_v55, 1 }
 0x1bd   :  { %926 = vset.pattern.permute.xlu0 %v972_v15 }
 0x1c5   :  { %492 = vperm.xlu1 %921, %v449_v32  }
 0x1cd   :  { %924 = vset.pattern.permute.xlu1 %v971_v7 }
 0x1ce   :  { %559 = vperm.xlu1 %924, %v450_v37  }
 0x1d4   :  { %v347_v44 = vpop.xlane.xlu1 %346 }
 0x1d5   :  { %959 = vrcp.f32 %v347_v44 }
 0x1d6   :  { %928 = vset.pattern.permute.xlu1 %v974_v23 }
 0x1db   :  { %v960_v47 = vpop.eup %959 }
 0x1dc   :  { %v355_v43 = vmul.f32 %v960_v47, %v1436_v57 }
 0x1de   :  { %404 = vst.msk [vmem:[%s1802_s9 + $0x18] sm:$0xff] %vm311_vm1, %v355_v43  ;;  %v452_v56 = vsel %vm448_vm10, %v355_v43, 0.0  ;;  %vm480_vm1 = vcmp.eq.s32.totalorder %v1393_v11, %v1531_v30  ;;  %vm484_vm10 = vcmp.eq.s32.totalorder %v1381_v4, %v1531_v30 }
 0x1e0   :  { %v383_v48 = vpop.xlane.xlu2 %382 }
 0x1e1   :  { %961 = vrcp.f32 %v383_v48 }
 0x1e7   :  { %v962_v50 = vpop.eup %961 }
 0x1e8   :  { %v397_v51 = vmul.f32 %v962_v50, %v1440_v60  ;;  %v441_v52 = vpop.permute.xlu2 %440 }
 0x1e9   :  { %vm447_vm9 = vcmp.eq.s32.totalorder %v441_v52, 1 }
 0x1ea   :  { %405 = vst.msk [vmem:[%s1803_s10] sm:$0xff] %vm356_vm2, %v397_v51  ;;  %v451_v54 = vsel %vm447_vm9, %v354_v46, 0.0  ;;  %vm483_vm9 = vcmp.eq.s32.totalorder %v1381_v4, %v1528_v29 }
 0x1eb   :  { %715 = vperm.xlu1 %928, %v451_v54   ;;  %563 = vperm.xlu2 %922, %v451_v54  }
 0x1ec   :  { %502 = vperm.xlu0 %926, %v451_v54  }
 0x1f3   :  { %679 = vperm.xlu1 %928, %v1321_v22   ;;  %927 = vset.pattern.permute.xlu2 %v973_v18 }
 0x1f4   :  { %931 = vset.pattern.permute.xlu0 %v971_v7  ;;  %639 = vperm.xlu2 %927, %v451_v54   ;;  %v1501_v7 = vpop.permute.xlu1 %682 }
 0x1f5   :  { %567 = vperm.xlu0 %931, %v452_v56  }
 0x1fb   :  { %934 = vset.pattern.permute.xlu1 %v973_v18 }
 0x1fc   :  { %929 = vset.pattern.permute.xlu2 %v972_v15  ;;  %643 = vperm.xlu1 %934, %v452_v56  }
 0x1fd   :  { %932 = vset.pattern.permute.xlu0 %v974_v23  ;;  %507 = vperm.xlu2 %929, %v452_v56  }
 0x1fe   :  { %711 = vperm.xlu0 %932, %v450_v37  }
 0x204   :  { %935 = vset.pattern.permute.xlu1 %v974_v23 }
 0x205   :  { %719 = vperm.xlu1 %935, %v452_v56   ;;  %930 = vset.pattern.permute.xlu2 %v973_v18  ;;  %v184_v18 = vpop.f32.mrf.mxu2 }
 0x206   :  { %631 = vperm.xlu2 %930, %v449_v32   ;;  %v185_v8 = vadd.f32 %v937_v53, %v184_v18 }
 0x208   :  { %v214_v20 = vadd.f32 %v1335_v25, %v185_v8 }
 0x20d   :  { %v187_v49 = vpop.f32.mrf.mxu2 }
 0x20e   :  { %933 = vset.pattern.permute.xlu2 %v974_v23  ;;  %v372_v23 = vsub.f32 %v1372_v1, %v1453_v26  ;;  %v188_v21 = vadd.f32 %v937_v53, %v187_v49 }
 0x20f   :  { %707 = vperm.xlu2 %933, %v449_v32  }
 0x210   :  { %v379_v61 = vmul.f32 1.442695, %v372_v23  ;;  %v217_v25 = vadd.f32 %v1340_v28, %v188_v21  ;;  %v1553_v28 = vpop.permute.xlu2 %603 }
 0x215   :  { %v190_v26 = vpop.f32.mrf.mxu2 }
 0x216   :  { %v191_v62 = vadd.f32 %v937_v53, %v190_v26 }
 0x217   :  { %v386_v22 = vpop.xlane.xlu1 %385 }
 0x218   :  { %963 = vrcp.f32 %v386_v22  ;;  %v220_v56 = vadd.f32 %v1346_v34, %v191_v62  ;;  %v1596_v22 = vpop.permute.xlu2 %555 }
 0x21e   :  { %v964_v57 = vpop.eup %963  ;;  %v498_v1 = vpop.permute.xlu0 %497 }
 0x21f   :  { %v398_v15 = vmul.f32 %v964_v57, %v1456_v33  ;;  %v389_v58 = vpop.xlane.xlu1 %388  ;;  %v1534_v33 = vadd.s32 384, %v1520_v9  ;;  %v514_v2 = vsel %vm478_vm15, %v498_v1, 0.0  ;;  %v515_v35 = vsel %vm479_vm0, %v498_v1, 0.0  ;;  %v193_v57 = vpop.f32.mrf.mxu2 }
 0x220   :  { %965 = vrcp.f32 %v389_v58  ;;  %v516_v31 = vsel %vm480_vm1, %v498_v1, 0.0  ;;  %vm622_vm0 = vcmp.eq.s32.totalorder %v1399_v14, %v1520_v9  ;;  %vm623_vm1 = vcmp.eq.s32.totalorder %v1399_v14, %v1528_v29 }
 0x221   :  { %406 = vst.msk [vmem:[%s1803_s10 + $0x8] sm:$0xff] %vm356_vm2, %v398_v15  ;;  %967 = vpow2.f32 %v379_v61  ;;  %vm545_vm14 = vcmp.eq.s32.totalorder %v1397_v13, %v1534_v33  ;;  %vm481_vm3 = vcmp.eq.s32.totalorder %v1393_v11, %v1534_v33  ;;  %vm621_vm5 = vcmp.eq.s32.totalorder %v1408_v27, %v1534_v33 }
 0x222   :  { %v517_v38 = vsel %vm481_vm3, %v498_v1, 0.0  ;;  %v194_v15 = vadd.f32 %v937_v53, %v193_v57  ;;  %vm549_vm15 = vcmp.eq.s32.totalorder %v1391_v10, %v1534_v33  ;;  %vm624_vm3 = vcmp.eq.s32.totalorder %v1399_v14, %v1531_v30 }
 0x224   :  { %v223_v58 = vadd.f32 %v1352_v40, %v194_v15 }
 0x226   :  { %v966_v59 = vpop.eup %965 }
 0x227   :  { %v399_v60 = vmul.f32 %v966_v59, %v1465_v41  ;;  %v1518_v0 = vpop.eup %967  ;;  %v636_v41 = vpop.permute.xlu0 %635 }
 0x228   :  { %v390_v12 = vsel %vm356_vm2, %v1518_v0, 0.0  ;;  %v652_v43 = vsel %vm620_vm4, %v636_v41, 0.0  ;;  %v653_v48 = vsel %vm621_vm5, %v636_v41, 0.0  ;;  %v650_v50 = vsel %vm618_vm6, %v636_v41, 0.0 }
 0x229   :  { %407 = vst.msk [vmem:[%s1803_s10 + $0x10] sm:$0xff] %vm356_vm2, %v399_v60  ;;  %v651_v13 = vsel %vm619_vm7, %v636_v41, 0.0  ;;  %vm625_vm4 = vcmp.eq.s32.totalorder %v1399_v14, %v1534_v33  ;;  %vm486_vm5 = vcmp.eq.s32.totalorder %v1379_v3, %v1520_v9  ;;  %vm487_vm6 = vcmp.eq.s32.totalorder %v1379_v3, %v1528_v29 }
 0x22a   :  { %vm488_vm7 = vcmp.eq.s32.totalorder %v1379_v3, %v1531_v30 }
 0x237   :  { %v1522_v17 = vpop.permute.xlu1 %492 }
 0x238   :  { %391 = vadd.xlane.f32.xlu2 %v390_v12 }
 0x23a   :  { %754 = vxpose.xlu1.b32.start [1/4] (short) (narrow) %v214_v20, 8 }
 0x240   :  { %v560_v11 = vpop.permute.xlu1 %559 }
 0x241   :  { %v574_v32 = vsel %vm542_vm11, %v560_v11, 0.0  ;;  %v575_v42 = vsel %vm543_vm12, %v560_v11, 0.0  ;;  %v576_v37 = vsel %vm544_vm13, %v560_v11, 0.0  ;;  %v577_v45 = vsel %vm545_vm14, %v560_v11, 0.0 }
 0x242   :  { %v592_v39 = vadd.f32 %v576_v37, %v516_v31  ;;  %v593_v46 = vadd.f32 %v577_v45, %v517_v38  ;;  %755 = vxpose.xlu1.b32.cont [2/4] (short) (narrow) %v217_v25, 8  ;;  %v590_v44 = vadd.f32 %v574_v32, %v514_v2  ;;  %v591_v47 = vadd.f32 %v575_v42, %v515_v35 }
 0x243   :  { %vm485_vm11 = vcmp.eq.s32.totalorder %v1381_v4, %v1534_v33  ;;  %vm546_vm12 = vcmp.eq.s32.totalorder %v1391_v10, %v1520_v9  ;;  %vm547_vm13 = vcmp.eq.s32.totalorder %v1391_v10, %v1528_v29  ;;  %vm548_vm14 = vcmp.eq.s32.totalorder %v1391_v10, %v1531_v30 }
 0x244   :  { %v1587_v51 = vadd.f32 %v650_v50, %v590_v44  ;;  %v1589_v52 = vadd.f32 %v651_v13, %v591_v47  ;;  %v1591_v54 = vadd.f32 %v652_v43, %v592_v39  ;;  %v1593_v55 = vadd.f32 %v653_v48, %v593_v46 }
 0x245   :  { %v564_v59 = vpop.permute.xlu2 %563 }
 0x246   :  { %v578_v40 = vsel %vm546_vm12, %v564_v59, 0.0  ;;  %v579_v18 = vsel %vm547_vm13, %v564_v59, 0.0  ;;  %v580_v23 = vsel %vm548_vm14, %v564_v59, 0.0  ;;  %v581_v60 = vsel %vm549_vm15, %v564_v59, 0.0 }
 0x247   :  { %vm553_vm12 = vcmp.eq.s32.totalorder %v1383_v5, %v1534_v33  ;;  %vm628_vm13 = vcmp.eq.s32.totalorder %v1385_v6, %v1531_v30  ;;  %vm629_vm14 = vcmp.eq.s32.totalorder %v1385_v6, %v1534_v33  ;;  %vm474_vm15 = vcmp.eq.s32.totalorder %v1406_v24, %v1520_v9 }
 0x24a   :  { %756 = vxpose.xlu1.b32.cont [3/4] (short) (narrow) %v220_v56, 8 }
 0x24e   :  { %v640_v27 = vpop.permute.xlu2 %639 }
 0x24f   :  { %v654_v21 = vsel %vm622_vm0, %v640_v27, 0.0  ;;  %v655_v26 = vsel %vm623_vm1, %v640_v27, 0.0  ;;  %v656_v4 = vsel %vm624_vm3, %v640_v27, 0.0  ;;  %v657_v25 = vsel %vm625_vm4, %v640_v27, 0.0 }
 0x250   :  { %vm626_vm0 = vcmp.eq.s32.totalorder %v1385_v6, %v1520_v9  ;;  %vm627_vm1 = vcmp.eq.s32.totalorder %v1385_v6, %v1528_v29  ;;  %vm696_vm3 = vcmp.eq.s32.totalorder %v1501_v7, %v1531_v30  ;;  %vm697_vm4 = vcmp.eq.s32.totalorder %v1501_v7, %v1534_v33 }
 0x252   :  { %757 = vxpose.xlu1.b32.end [4/4] (short) (narrow) %v223_v58, 8 }
 0x257   :  { %v508_v38 = vpop.permute.xlu2 %507 }
 0x258   :  { %v522_v41 = vsel %vm486_vm5, %v508_v38, 0.0  ;;  %v523_v11 = vsel %vm487_vm6, %v508_v38, 0.0  ;;  %v524_v32 = vsel %vm488_vm7, %v508_v38, 0.0  ;;  %vm694_vm5 = vcmp.eq.s32.totalorder %v1501_v7, %v1520_v9 }
 0x259   :  { %vm695_vm6 = vcmp.eq.s32.totalorder %v1501_v7, %v1528_v29  ;;  %vm475_vm7 = vcmp.eq.s32.totalorder %v1406_v24, %v1528_v29 }
 0x25d   :  { %v1615_v34 = vpop.permute.xlu1 %715 }
 0x25e   :  { %v503_v61 = vpop.permute.xlu0 %502 }
 0x25f   :  { %v518_v53 = vsel %vm482_vm8, %v503_v61, 0.0  ;;  %v519_v10 = vsel %vm483_vm9, %v503_v61, 0.0  ;;  %v520_v49 = vsel %vm484_vm10, %v503_v61, 0.0  ;;  %v521_v63 = vsel %vm485_vm11, %v503_v61, 0.0 }
 0x260   :  { %v596_v8 = vadd.f32 %v580_v23, %v520_v49  ;;  %v597_v1 = vadd.f32 %v581_v60, %v521_v63  ;;  %v594_v12 = vadd.f32 %v578_v40, %v518_v53  ;;  %v595_v20 = vadd.f32 %v579_v18, %v519_v10  ;;  %v1687_v50 = vpop.permute.xlu2 %631 }
 0x261   :  { %vm550_vm8 = vcmp.eq.s32.totalorder %v1383_v5, %v1520_v9  ;;  %vm489_vm9 = vcmp.eq.s32.totalorder %v1379_v3, %v1534_v33  ;;  %vm551_vm10 = vcmp.eq.s32.totalorder %v1383_v5, %v1528_v29  ;;  %vm552_vm11 = vcmp.eq.s32.totalorder %v1383_v5, %v1531_v30 }
 0x262   :  { %v1643_v62 = vadd.f32 %v654_v21, %v594_v12  ;;  %v1645_v2 = vadd.f32 %v655_v26, %v595_v20  ;;  %v1647_v35 = vadd.f32 %v656_v4, %v596_v8  ;;  %v1649_v31 = vadd.f32 %v657_v25, %v597_v1 }
 0x263   :  { %v525_v42 = vsel %vm489_vm9, %v508_v38, 0.0  ;;  %v510_v63 = vsel %vm474_vm15, %v1522_v17, 0.0  ;;  %vm539_vm9 = vcmp.eq.s32.totalorder %v1401_v16, %v1528_v29  ;;  %vm698_vm15 = vcmp.eq.s32.totalorder %v1415_v36, %v1520_v9 }
 0x264   :  { %v730_v1 = vsel %vm698_vm15, %v1615_v34, 0.0  ;;  %vm786_vm15 = vcmask 261120  }
 0x265   :  { %v1659_v14 = vpop.permute.xlu1 %679 }
 0x267   :  { %v568_v37 = vpop.permute.xlu0 %567 }
 0x268   :  { %v582_v45 = vsel %vm550_vm8, %v568_v37, 0.0  ;;  %v583_v39 = vsel %vm551_vm10, %v568_v37, 0.0  ;;  %v584_v46 = vsel %vm552_vm11, %v568_v37, 0.0  ;;  %v585_v44 = vsel %vm553_vm12, %v568_v37, 0.0 }
 0x269   :  { %v600_v47 = vadd.f32 %v584_v46, %v524_v32  ;;  %v601_v3 = vadd.f32 %v585_v44, %v525_v42  ;;  %v598_v43 = vadd.f32 %v582_v45, %v522_v41  ;;  %v599_v48 = vadd.f32 %v583_v39, %v523_v11  ;;  %v708_v25 = vpop.permute.xlu2 %707 }
 0x26a   :  { %vm538_vm8 = vcmp.eq.s32.totalorder %v1401_v16, %v1520_v9  ;;  %vm704_vm10 = vcmp.eq.s32.totalorder %v1403_v19, %v1531_v30  ;;  %vm705_vm11 = vcmp.eq.s32.totalorder %v1403_v19, %v1534_v33  ;;  %vm702_vm12 = vcmp.eq.s32.totalorder %v1403_v19, %v1520_v9 }
 0x26b   :  { %v746_v42 = vadd.f32 %v730_v1, %v1643_v62 }
 0x26e   :  { %v644_v5 = vpop.permute.xlu1 %643 }
 0x26f   :  { %v660_v13 = vsel %vm628_vm13, %v644_v5, 0.0  ;;  %v661_v56 = vsel %vm629_vm14, %v644_v5, 0.0  ;;  %v658_v57 = vsel %vm626_vm0, %v644_v5, 0.0  ;;  %v659_v15 = vsel %vm627_vm1, %v644_v5, 0.0 }
 0x270   :  { %v676_v6 = vadd.f32 %v660_v13, %v600_v47  ;;  %v677_v58 = vadd.f32 %v661_v56, %v601_v3  ;;  %v712_v59 = vpop.permute.xlu0 %711  ;;  %v674_v27 = vadd.f32 %v658_v57, %v598_v43  ;;  %v675_v40 = vadd.f32 %v659_v15, %v599_v48 }
 0x271   :  { %v728_v18 = vsel %vm696_vm3, %v712_v59, 0.0  ;;  %v729_v23 = vsel %vm697_vm4, %v712_v59, 0.0  ;;  %v726_v60 = vsel %vm694_vm5, %v712_v59, 0.0  ;;  %v727_v61 = vsel %vm695_vm6, %v712_v59, 0.0 }
 0x272   :  { %v742_v53 = vadd.f32 %v726_v60, %v1587_v51  ;;  %v743_v10 = vadd.f32 %v727_v61, %v1589_v52  ;;  %v1692_v7 = vadd.f32 %v728_v18, %v1591_v54  ;;  %v1695_v49 = vadd.f32 %v729_v23, %v1593_v55 }
 0x273   :  { %v511_v51 = vsel %vm475_vm7, %v1522_v17, 0.0  ;;  %v570_v52 = vsel %vm538_vm8, %v1596_v22, 0.0  ;;  %vm703_vm13 = vcmp.eq.s32.totalorder %v1403_v19, %v1528_v29  ;;  %vm540_vm14 = vcmp.eq.s32.totalorder %v1401_v16, %v1531_v30 }
 0x274   :  { %v571_v54 = vsel %vm539_vm9, %v1596_v22, 0.0  ;;  %vm699_vm0 = vcmp.eq.s32.totalorder %v1415_v36, %v1528_v29  ;;  %v586_v55 = vadd.f32 %v570_v52, %v510_v63  ;;  %vm614_vm1 = vcmp.eq.s32.totalorder %v1553_v28, %v1520_v9 }
 0x275   :  { %v587_v12 = vadd.f32 %v571_v54, %v511_v51  ;;  %vm615_vm3 = vcmp.eq.s32.totalorder %v1553_v28, %v1528_v29  ;;  %v731_v37 = vsel %vm699_vm0, %v1615_v34, 0.0  ;;  %v646_v45 = vsel %vm614_vm1, %v1687_v50, 0.0 }
 0x276   :  { %v647_v19 = vsel %vm615_vm3, %v1687_v50, 0.0  ;;  %v747_v39 = vadd.f32 %v731_v37, %v1645_v2  ;;  %vm690_vm4 = vcmp.eq.s32.totalorder %v1659_v14, %v1520_v9  ;;  %vm691_vm5 = vcmp.eq.s32.totalorder %v1659_v14, %v1528_v29 }
 0x277   :  { %v720_v8 = vpop.permute.xlu1 %719  ;;  %vm476_vm6 = vcmp.eq.s32.totalorder %v1406_v24, %v1531_v30  ;;  %vm477_vm7 = vcmp.eq.s32.totalorder %v1406_v24, %v1534_v33  ;;  %v722_v62 = vsel %vm690_vm4, %v708_v25, 0.0  ;;  %v723_v46 = vsel %vm691_vm5, %v708_v25, 0.0 }
 0x278   :  { %v736_v20 = vsel %vm704_vm10, %v720_v8, 0.0  ;;  %v737_v21 = vsel %vm705_vm11, %v720_v8, 0.0  ;;  %v734_v26 = vsel %vm702_vm12, %v720_v8, 0.0  ;;  %v735_v4 = vsel %vm703_vm13, %v720_v8, 0.0 }
 0x279   :  { %v752_v38 = vadd.f32 %v736_v20, %v676_v6  ;;  %v753_v41 = vadd.f32 %v737_v21, %v677_v58  ;;  %v750_v11 = vadd.f32 %v734_v26, %v674_v27  ;;  %v751_v32 = vadd.f32 %v735_v4, %v675_v40 }
 0x27a   :  { %v512_v44 = vsel %vm476_vm6, %v1522_v17, 0.0  ;;  %v513_v47 = vsel %vm477_vm7, %v1522_v17, 0.0  ;;  %v662_v2 = vadd.f32 %v646_v45, %v586_v55  ;;  %v663_v3 = vadd.f32 %v647_v19, %v587_v12 }
 0x27b   :  { %802 = vmatpush.msrb.mxu0 %v750_v11  ;;  %822 = vmatpush.msrb.mxu2 %v751_v32  ;;  %vm541_vm8 = vcmp.eq.s32.totalorder %v1401_v16, %v1534_v33  ;;  %vm700_vm9 = vcmp.eq.s32.totalorder %v1415_v36, %v1531_v30  ;;  %vm616_vm10 = vcmp.eq.s32.totalorder %v1553_v28, %v1531_v30  ;;  %v572_v24 = vsel %vm540_vm14, %v1596_v22, 0.0 }
 0x27c   :  { %vm617_vm11 = vcmp.eq.s32.totalorder %v1553_v28, %v1534_v33  ;;  %v573_v9 = vsel %vm541_vm8, %v1596_v22, 0.0  ;;  %v738_v17 = vadd.f32 %v722_v62, %v662_v2  ;;  %v739_v29 = vadd.f32 %v723_v46, %v663_v3 }
 0x27d   :  { %803 = vmatpush.msrb.mxu0 %v746_v42  ;;  %823 = vmatpush.msrb.mxu2 %v747_v39  ;;  %vm701_vm12 = vcmp.eq.s32.totalorder %v1415_v36, %v1534_v33  ;;  %v588_v43 = vadd.f32 %v572_v24, %v512_v44  ;;  %v589_v48 = vadd.f32 %v573_v9, %v513_v47  ;;  %v732_v5 = vsel %vm700_vm9, %v1615_v34, 0.0 }
 0x27e   :  { %v648_v28 = vsel %vm616_vm10, %v1687_v50, 0.0  ;;  %v649_v13 = vsel %vm617_vm11, %v1687_v50, 0.0  ;;  %v748_v16 = vadd.f32 %v732_v5, %v1647_v35  ;;  %v733_v22 = vsel %vm701_vm12, %v1615_v34, 0.0 }
 0x27f   :  { %804 = vmatpush.msrb.mxu0 %v742_v53  ;;  %824 = vmatpush.msrb.mxu2 %v743_v10  ;;  %vm692_vm13 = vcmp.eq.s32.totalorder %v1659_v14, %v1531_v30  ;;  %vm693_vm14 = vcmp.eq.s32.totalorder %v1659_v14, %v1534_v33  ;;  %v749_v36 = vadd.f32 %v733_v22, %v1649_v31 }
 0x280   :  { %v724_v56 = vsel %vm692_vm13, %v708_v25, 0.0  ;;  %v725_v57 = vsel %vm693_vm14, %v708_v25, 0.0  ;;  %v664_v50 = vadd.f32 %v648_v28, %v588_v43  ;;  %v665_v15 = vadd.f32 %v649_v13, %v589_v48 }
 0x281   :  { %805 = vmatpush.msrb.mxu0 %v738_v17  ;;  %825 = vmatpush.msrb.mxu2 %v739_v29 }
 0x282   :  { %v740_v34 = vadd.f32 %v724_v56, %v664_v50  ;;  %v741_v35 = vadd.f32 %v725_v57, %v665_v15 }
 0x283   :  { %842 = vmatpush.msra.mxu0 %v752_v38  ;;  %862 = vmatpush.msra.mxu2 %v753_v41 }
 0x285   :  { %843 = vmatpush.msra.mxu0 %v748_v16  ;;  %863 = vmatpush.msra.mxu2 %v749_v36 }
 0x287   :  { %844 = vmatpush.msra.mxu0 %v1692_v7  ;;  %864 = vmatpush.msra.mxu2 %v1695_v49 }
 0x289   :  { %845 = vmatpush.msra.mxu0 %v740_v34  ;;  %865 = vmatpush.msra.mxu2 %v741_v35 }
 0x2ab   :  { %v392_v30 = vpop.xlane.xlu2 %391 }
 0x2ac   :  { %969 = vrcp.f32 %v392_v30 }
 0x2b2   :  { %v970_v33 = vpop.eup %969 }
 0x2b3   :  { %v400_v14 = vmul.f32 %v970_v33, %v1518_v0 }
 0x2b5   :  { %408 = vst.msk [vmem:[%s1803_s10 + $0x18] sm:$0xff] %vm356_vm2, %v400_v14 }
 0x2de   :  { %v770_v31 = vpop.trf.xlu1 }
 0x2df   :  { %898 = vmatmul.msk.f32.vlgmr.msrb.gmra.mxu0 %vm786_vm15, %v770_v31  ;;  %899 = vmatmul.msk.f32.vlgmr.msrb.gmra.mxu2 %vm786_vm15, %v770_v31 }
 0x2e7   :  { %900 = vmatmul.msk.f32.vlgmr.msra.gmra.mxu0 %vm786_vm15, %v770_v31  ;;  %901 = vmatmul.msk.f32.vlgmr.msra.gmra.mxu2 %vm786_vm15, %v770_v31 }
 0x35c   :  { %v807_v6 = vpop.f32.mrf.mxu0 }
 0x35d   :  { %870 = vst [vmem:[%s1804_s8] sm:$0xff] %v807_v6 }
 0x362   :  { %v827_v58 = vpop.f32.mrf.mxu2 }
 0x363   :  { %871 = vst [vmem:[%s1804_s8 + $0x8] sm:$0xff] %v827_v58 }
 0x364   :  { %v847_v0 = vpop.f32.mrf.mxu0 }
 0x365   :  { %872 = vst [vmem:[%s1804_s8 + $0x10] sm:$0xff] %v847_v0 }
 0x36a   :  { %v867_v59 = vpop.f32.mrf.mxu2 }
 0x36b   :  { %873 = vst [vmem:[%s1804_s8 + $0x18] sm:$0xff] %v867_v59 }

</bundles_post_ra>
